<compile_context>
chip_gen: v7x
topology: tpu7x:2x2x1
jax: 0.10.0
libtpu: 0.0.40
codegen_flags: <defaults>
</compile_context>

<pallas_src>
import functools

import jax
import jax.numpy as jnp
from jax.experimental import pallas as pl
from jax.experimental.pallas import tpu as pltpu

_LANE = 128
_SUBLANE = 8


def _round_up(n, m):
    return ((n + m - 1) // m) * m


def _vmem_capacity_bytes():
    """Generation-aware VMEM capacity (128 MiB v5e/v6e, 64 MiB per-TC v7x)."""
    try:
        cap = int(pltpu.get_tpu_info().vmem_capacity_bytes)
        if cap > 0:
            return cap
    except Exception:
        pass
    return 64 * 1024 * 1024  # conservative fallback (v7x per-TensorCore VMEM)


def _mlp_kernel(num_layers, x_ref, *refs):
    """Fused MLP on one batch tile: (Linear + ReLU) x (num_layers - 1), Linear.

    refs = (w0, b0, w1, b1, ..., w_last, b_last, out_ref).
    Weights are bf16 (MXU-native); accumulation is f32 via
    preferred_element_type; bias add + ReLU stay f32 on the VPU.
    """
    out_ref = refs[-1]
    params = refs[:-1]

    # In-kernel cast of the streamed activations to bf16 (VPU cast, cheap).
    x = x_ref[...].astype(jnp.bfloat16)
    for i in range(num_layers - 1):
        w = params[2 * i][...]        # bf16
        b = params[2 * i + 1][...]    # f32
        h = jnp.dot(x, w, preferred_element_type=jnp.float32) + b
        x = jnp.maximum(h, 0.0).astype(jnp.bfloat16)
    w = params[-2][...]
    b = params[-1][...]
    out_ref[...] = jnp.dot(x, w, preferred_element_type=jnp.float32) + b


def prepare_params(params):
    """One-time weight preparation (call once, cache the result across calls).

    Casts W to bf16 (halves resident VMEM / HBM traffic, 2-3x MXU throughput),
    keeps biases f32 as (1, out) rows. No per-call padding passes over weights.
    """
    prepared = []
    for w, b in params:
        prepared.append((jnp.asarray(w, jnp.bfloat16),
                         jnp.asarray(b, jnp.float32).reshape(1, -1)))
    return prepared


def mlp_forward(x, prepared_params, *, batch_tile=512):
    """Fused MLP forward. prepared_params = prepare_params(params).

    Weights stay VMEM-resident (constant index_map) while x/out are streamed
    per batch tile. For best MXU utilization prefer hidden widths that are
    multiples of 256 on v6e/v7x (128 suffices on v5e); no extra padding is
    done here.
    """
    batch, in_features = x.shape
    num_layers = len(prepared_params)
    out_features = prepared_params[-1][0].shape[1]
    max_width = max(max(w.shape) for w, _ in prepared_params)

    # ---- VMEM accounting (counts Mosaic's default 2x input double-buffering) ----
    weight_bytes = sum(w.size * w.dtype.itemsize + b.size * b.dtype.itemsize
                       for w, b in prepared_params)
    resident_bytes = 2 * weight_bytes                        # double-buffered weight/bias specs
    per_row_bytes = 4 * (2 * (in_features + out_features)    # double-buffered x/out tiles (f32)
                         + 2 * max_width)                     # live activation + matmul temps
    cap = _vmem_capacity_bytes()
    budget = cap - 8 * 1024 * 1024                            # headroom for Mosaic internals

    # ---- batch tile selection ----
    batch_p = _round_up(batch, _SUBLANE)
    if batch_p <= batch_tile:
        # Split into >=2 grid steps when the batch allows it so the "parallel"
        # axis can shard across v7x's two TensorCores (harmless on v5e/v6e).
        half = _round_up((batch_p + 1) // 2, _SUBLANE)
        tb = half if half < batch_p else batch_p
    else:
        tb = batch_tile
        # Grow the tile (512 -> 1024) to amortize per-grid-step overhead and
        # improve DMA/compute overlap, as long as the VMEM budget allows it.
        while (tb * 2 <= 1024 and batch_p >= tb * 4
               and resident_bytes + (tb * 2) * per_row_bytes <= budget // 2):
            tb *= 2
    batch_p = _round_up(batch, tb)

    est_bytes = resident_bytes + tb * per_row_bytes
    vmem_limit = None
    if est_bytes > 12 * 1024 * 1024:  # would trip the default scoped VMEM limit
        vmem_limit = min(_round_up(est_bytes + est_bytes // 4, 1 << 20), budget)
    # TODO(synk): when resident_bytes alone exceeds `budget` (very wide/deep MLPs,
    # especially on v7x's 64 MiB VMEM), switch to a layer-streaming path (layer
    # grid axis or pltpu.emit_pipeline over pl.ANY weight refs, 2-deep buffered)
    # instead of the weight-resident design.

    # ---- only the batch dim is ever padded; feature dims stay full-extent ----
    if batch_p != batch:
        x_p = jnp.zeros((batch_p, in_features), x.dtype).at[:batch].set(x)
    else:
        x_p = x

    flat_inputs = [x_p]
    in_specs = [pl.BlockSpec((tb, in_features), lambda i: (i, 0))]
    for w, b in prepared_params:
        flat_inputs.append(w)
        in_specs.append(pl.BlockSpec(w.shape, lambda i: (0, 0)))   # VMEM-resident
        flat_inputs.append(b)
        in_specs.append(pl.BlockSpec(b.shape, lambda i: (0, 0)))   # VMEM-resident
    out_specs = pl.BlockSpec((tb, out_features), lambda i: (i, 0))
    out_shape = jax.ShapeDtypeStruct((batch_p, out_features), jnp.float32)

    kernel = functools.partial(_mlp_kernel, num_layers)
    out = pl.pallas_call(
        kernel,
        out_shape=out_shape,
        grid=(batch_p // tb,),
        in_specs=in_specs,
        out_specs=out_specs,
        compiler_params=pltpu.CompilerParams(
            dimension_semantics=("parallel",),
            vmem_limit_bytes=vmem_limit,
        ),
    )(*flat_inputs)

    return out[:batch] if batch_p != batch else out


def init_params(key, input_size, hidden_layer_width, depth):
    """Deterministic PyTorch-Linear-style init: U(-1/sqrt(fan_in), 1/sqrt(fan_in))."""
    dims = [input_size] + [hidden_layer_width] * depth + [1]
    params = []
    for i in range(len(dims) - 1):
        fan_in, fan_out = dims[i], dims[i + 1]
        key, kw, kb = jax.random.split(key, 3)
        bound = 1.0 / jnp.sqrt(jnp.float32(fan_in))
        w = jax.random.uniform(kw, (fan_in, fan_out), jnp.float32, -bound, bound)
        b = jax.random.uniform(kb, (1, fan_out), jnp.float32, -bound, bound)
        params.append((w, b))
    return params


def reference_forward(x, params):
    """Pure-JAX f32 reference mirroring the PyTorch module's forward."""
    h = x
    for w, b in params[:-1]:
        h = jnp.maximum(h @ w + b, 0.0)
    w, b = params[-1]
    return h @ w + b


if __name__ == "__main__":
    # Small synthetic shapes consistent with the module:
    # tabular features -> NN(input_size, hidden_layer_width, depth).
    batch = 8
    input_size = 16
    hidden_layer_width = 32
    depth = 3

    key = jax.random.PRNGKey(0)
    key, kx = jax.random.split(key)
    x = jax.random.normal(kx, (batch, input_size), dtype=jnp.float32)

    params = init_params(key, input_size, hidden_layer_width, depth)
    prepared = prepare_params(params)   # one-time cast/layout; cache across calls

    out = mlp_forward(x, prepared)
    out = jax.block_until_ready(out)

    ref = reference_forward(x, params)
    assert out.shape == (batch, 1), out.shape
    assert bool(jnp.all(jnp.isfinite(out))), "non-finite output"
    # bf16 matmul inputs with f32 accumulation vs a pure-f32 reference.
    assert jnp.allclose(out, ref, atol=3e-2, rtol=3e-2), "mismatch vs reference"

    print("KERNEL_OK")
</pallas_src>

<mosaic_0001>
module attributes {stable_mosaic.version = 11 : i64} {
  func.func @_mlp_kernel(%arg0: i32, %arg1: memref<8x16xf32, #tpu.memory_space<vmem>>, %arg2: memref<16x32xbf16, #tpu.memory_space<vmem>>, %arg3: memref<1x32xf32, #tpu.memory_space<vmem>>, %arg4: memref<32x32xbf16, #tpu.memory_space<vmem>>, %arg5: memref<1x32xf32, #tpu.memory_space<vmem>>, %arg6: memref<32x32xbf16, #tpu.memory_space<vmem>>, %arg7: memref<1x32xf32, #tpu.memory_space<vmem>>, %arg8: memref<32x1xbf16, #tpu.memory_space<vmem>>, %arg9: memref<1x1xf32, #tpu.memory_space<vmem>>, %arg10: memref<8x1xf32, #tpu.memory_space<vmem>>) attributes {dimension_semantics = [#tpu.dimension_semantics<parallel>], iteration_bounds = array<i64: 1>, scalar_prefetch = 0 : i64, scratch_operands = 0 : i64, tpu.core_type = #tpu.core_type<tc>, window_params = [{transform_indices = @transform_0, window_bounds = array<i64: 8, 16>}, {pipeline_mode = #tpu.pipeline_mode<synchronous>, transform_indices = @transform_1, window_bounds = array<i64: 16, 32>}, {pipeline_mode = #tpu.pipeline_mode<synchronous>, transform_indices = @transform_2, window_bounds = array<i64: 1, 32>}, {pipeline_mode = #tpu.pipeline_mode<synchronous>, transform_indices = @transform_3, window_bounds = array<i64: 32, 32>}, {pipeline_mode = #tpu.pipeline_mode<synchronous>, transform_indices = @transform_4, window_bounds = array<i64: 1, 32>}, {pipeline_mode = #tpu.pipeline_mode<synchronous>, transform_indices = @transform_5, window_bounds = array<i64: 32, 32>}, {pipeline_mode = #tpu.pipeline_mode<synchronous>, transform_indices = @transform_6, window_bounds = array<i64: 1, 32>}, {pipeline_mode = #tpu.pipeline_mode<synchronous>, transform_indices = @transform_7, window_bounds = array<i64: 32, 1>}, {pipeline_mode = #tpu.pipeline_mode<synchronous>, transform_indices = @transform_8, window_bounds = array<i64: 1, 1>}, {transform_indices = @transform_9, window_bounds = array<i64: 8, 1>}]} {
    %c0 = arith.constant 0 : index
    %c0_0 = arith.constant 0 : index
    %0 = vector.load %arg1[%c0, %c0_0] : memref<8x16xf32, #tpu.memory_space<vmem>>, vector<8x16xf32>
    %1 = arith.truncf %0 : vector<8x16xf32> to vector<8x16xbf16>
    %c0_1 = arith.constant 0 : index
    %c0_2 = arith.constant 0 : index
    %2 = vector.load %arg2[%c0_1, %c0_2] : memref<16x32xbf16, #tpu.memory_space<vmem>>, vector<16x32xbf16>
    %c0_3 = arith.constant 0 : index
    %c0_4 = arith.constant 0 : index
    %3 = vector.load %arg3[%c0_3, %c0_4] : memref<1x32xf32, #tpu.memory_space<vmem>>, vector<1x32xf32>
    %cst = arith.constant dense<0.000000e+00> : vector<8x32xf32>
    %4 = tpu.matmul %1, %2, %cst {dimension_numbers = #tpu.dot_dimension_numbers<[1], [0], [0], [1], [0, 0, 1, 1], [], []>} : vector<8x16xbf16>, vector<16x32xbf16>, vector<8x32xf32> -> vector<8x32xf32>
    %5 = vector.broadcast %3 : vector<1x32xf32> to vector<8x32xf32>
    %6 = arith.addf %4, %5 : vector<8x32xf32>
    %cst_5 = arith.constant 0.000000e+00 : f32
    %7 = vector.broadcast %cst_5 : f32 to vector<8x32xf32>
    %8 = arith.maximumf %6, %7 : vector<8x32xf32>
    %9 = arith.truncf %8 : vector<8x32xf32> to vector<8x32xbf16>
    %c0_6 = arith.constant 0 : index
    %c0_7 = arith.constant 0 : index
    %10 = vector.load %arg4[%c0_6, %c0_7] : memref<32x32xbf16, #tpu.memory_space<vmem>>, vector<32x32xbf16>
    %c0_8 = arith.constant 0 : index
    %c0_9 = arith.constant 0 : index
    %11 = vector.load %arg5[%c0_8, %c0_9] : memref<1x32xf32, #tpu.memory_space<vmem>>, vector<1x32xf32>
    %cst_10 = arith.constant dense<0.000000e+00> : vector<8x32xf32>
    %12 = tpu.matmul %9, %10, %cst_10 {dimension_numbers = #tpu.dot_dimension_numbers<[1], [0], [0], [1], [0, 0, 1, 1], [], []>} : vector<8x32xbf16>, vector<32x32xbf16>, vector<8x32xf32> -> vector<8x32xf32>
    %13 = vector.broadcast %11 : vector<1x32xf32> to vector<8x32xf32>
    %14 = arith.addf %12, %13 : vector<8x32xf32>
    %cst_11 = arith.constant 0.000000e+00 : f32
    %15 = vector.broadcast %cst_11 : f32 to vector<8x32xf32>
    %16 = arith.maximumf %14, %15 : vector<8x32xf32>
    %17 = arith.truncf %16 : vector<8x32xf32> to vector<8x32xbf16>
    %c0_12 = arith.constant 0 : index
    %c0_13 = arith.constant 0 : index
    %18 = vector.load %arg6[%c0_12, %c0_13] : memref<32x32xbf16, #tpu.memory_space<vmem>>, vector<32x32xbf16>
    %c0_14 = arith.constant 0 : index
    %c0_15 = arith.constant 0 : index
    %19 = vector.load %arg7[%c0_14, %c0_15] : memref<1x32xf32, #tpu.memory_space<vmem>>, vector<1x32xf32>
    %cst_16 = arith.constant dense<0.000000e+00> : vector<8x32xf32>
    %20 = tpu.matmul %17, %18, %cst_16 {dimension_numbers = #tpu.dot_dimension_numbers<[1], [0], [0], [1], [0, 0, 1, 1], [], []>} : vector<8x32xbf16>, vector<32x32xbf16>, vector<8x32xf32> -> vector<8x32xf32>
    %21 = vector.broadcast %19 : vector<1x32xf32> to vector<8x32xf32>
    %22 = arith.addf %20, %21 : vector<8x32xf32>
    %cst_17 = arith.constant 0.000000e+00 : f32
    %23 = vector.broadcast %cst_17 : f32 to vector<8x32xf32>
    %24 = arith.maximumf %22, %23 : vector<8x32xf32>
    %25 = arith.truncf %24 : vector<8x32xf32> to vector<8x32xbf16>
    %c0_18 = arith.constant 0 : index
    %c0_19 = arith.constant 0 : index
    %26 = vector.load %arg8[%c0_18, %c0_19] : memref<32x1xbf16, #tpu.memory_space<vmem>>, vector<32x1xbf16>
    %c0_20 = arith.constant 0 : index
    %c0_21 = arith.constant 0 : index
    %27 = vector.load %arg9[%c0_20, %c0_21] : memref<1x1xf32, #tpu.memory_space<vmem>>, vector<1x1xf32>
    %cst_22 = arith.constant dense<0.000000e+00> : vector<8x1xf32>
    %28 = tpu.matmul %25, %26, %cst_22 {dimension_numbers = #tpu.dot_dimension_numbers<[1], [0], [0], [1], [0, 0, 1, 1], [], []>} : vector<8x32xbf16>, vector<32x1xbf16>, vector<8x1xf32> -> vector<8x1xf32>
    %29 = vector.broadcast %27 : vector<1x1xf32> to vector<8x1xf32>
    %30 = arith.addf %28, %29 : vector<8x1xf32>
    %c0_23 = arith.constant 0 : index
    %c0_24 = arith.constant 0 : index
    %31 = vector.load %arg10[%c0_23, %c0_24] : memref<8x1xf32, #tpu.memory_space<vmem>>, vector<8x1xf32>
    tpu.vector_store %arg10[%c0_23, %c0_24], %30 {strides = array<i32>} : memref<8x1xf32, #tpu.memory_space<vmem>>, vector<8x1xf32>,
    return
  }
  func.func @transform_0(%arg0: i32) -> (i32, i32) {
    %c0_i32 = arith.constant 0 : i32
    %c0_i32_0 = arith.constant 0 : i32
    return %arg0, %c0_i32 : i32, i32
  }
  func.func @transform_1(%arg0: i32) -> (i32, i32) {
    %c0_i32 = arith.constant 0 : i32
    %c0_i32_0 = arith.constant 0 : i32
    %c0_i32_1 = arith.constant 0 : i32
    return %c0_i32, %c0_i32_0 : i32, i32
  }
  func.func @transform_2(%arg0: i32) -> (i32, i32) {
    %c0_i32 = arith.constant 0 : i32
    %c0_i32_0 = arith.constant 0 : i32
    %c0_i32_1 = arith.constant 0 : i32
    return %c0_i32, %c0_i32_0 : i32, i32
  }
  func.func @transform_3(%arg0: i32) -> (i32, i32) {
    %c0_i32 = arith.constant 0 : i32
    %c0_i32_0 = arith.constant 0 : i32
    %c0_i32_1 = arith.constant 0 : i32
    return %c0_i32, %c0_i32_0 : i32, i32
  }
  func.func @transform_4(%arg0: i32) -> (i32, i32) {
    %c0_i32 = arith.constant 0 : i32
    %c0_i32_0 = arith.constant 0 : i32
    %c0_i32_1 = arith.constant 0 : i32
    return %c0_i32, %c0_i32_0 : i32, i32
  }
  func.func @transform_5(%arg0: i32) -> (i32, i32) {
    %c0_i32 = arith.constant 0 : i32
    %c0_i32_0 = arith.constant 0 : i32
    %c0_i32_1 = arith.constant 0 : i32
    return %c0_i32, %c0_i32_0 : i32, i32
  }
  func.func @transform_6(%arg0: i32) -> (i32, i32) {
    %c0_i32 = arith.constant 0 : i32
    %c0_i32_0 = arith.constant 0 : i32
    %c0_i32_1 = arith.constant 0 : i32
    return %c0_i32, %c0_i32_0 : i32, i32
  }
  func.func @transform_7(%arg0: i32) -> (i32, i32) {
    %c0_i32 = arith.constant 0 : i32
    %c0_i32_0 = arith.constant 0 : i32
    %c0_i32_1 = arith.constant 0 : i32
    return %c0_i32, %c0_i32_0 : i32, i32
  }
  func.func @transform_8(%arg0: i32) -> (i32, i32) {
    %c0_i32 = arith.constant 0 : i32
    %c0_i32_0 = arith.constant 0 : i32
    %c0_i32_1 = arith.constant 0 : i32
    return %c0_i32, %c0_i32_0 : i32, i32
  }
  func.func @transform_9(%arg0: i32) -> (i32, i32) {
    %c0_i32 = arith.constant 0 : i32
    %c0_i32_0 = arith.constant 0 : i32
    return %arg0, %c0_i32 : i32, i32
  }
}

</mosaic_0001>

<bundles_post_ra>
// kernel: tpu_custom_call.1
= control target key start
LH: loop header
LB: loop body
LE: loop exit
PB: predicated region body
PF: predicated region fallthrough
CT: control target
= control target key end

     0   :  { %s616_s0 = inlined_call_operand.hbm [shape: f32[8,16], index: 0, kind: input, shape index: {}]   ;;  %s617_s1 = inlined_call_operand.hbm [shape: bf16[16,32], index: 1, kind: input, shape index: {}]   ;;  %s618_s2 = inlined_call_operand.hbm [shape: f32[1,32], index: 2, kind: input, shape index: {}]   ;;  %s619_s3 = inlined_call_operand.vmem [shape: bf16[32,32], index: 3, kind: input, shape index: {}]   ;;  %s620_s4 = inlined_call_operand.vmem [shape: f32[1,32], index: 4, kind: input, shape index: {}]   ;;  %s621_s5 = inlined_call_operand.vmem [shape: bf16[32,32], index: 5, kind: input, shape index: {}]   ;;  %s622_s6 = inlined_call_operand.vmem [shape: f32[1,32], index: 6, kind: input, shape index: {}]   ;;  %s623_s7 = inlined_call_operand.vmem [shape: bf16[32,1], index: 7, kind: input, shape index: {}]   ;;  %s624_s8 = inlined_call_operand.<no memory space> [shape: f32[1,1], index: 8, kind: input, shape index: {}]   ;;  %s625_s9 = inlined_call_operand.vmem [shape: f32[8,1], index: 9, kind: output, shape index: {}]  }
   0x1   :  { %v14_v0 = vstv %s624_s8 }
   0x2   :  { %15 = vst [vmem:[#allocation2] sm:$0x1] %v14_v0 }
   0x3   :  { %16 = vsyncpa [#allocation4], 0 }
   0x4   :  { %17 = vsyncpa [#allocation6], 0  ;;  %s486_s11 = smov [#allocation5]   ;;  %s416_s15 = scalar_lea.hbm %s617_s1, 128 }
   0x5   :  { %s33_s12 = sshll.u32 %s486_s11, 4  ;;  %p417_p0 = scmp.ne.s32.totalorder %s617_s1, %s416_s15  ;;  %s34_s12 = int_to_ptr.vmem [resolvable:$true] %s33_s12 }
   0x6   :  { %p420_p1 = scmp.lt.u32.totalorder %s416_s15, %s617_s1 }
   0x8   :  { %p422_p2 = pnand %p420_p1, %p417_p0 }
   0xa   :  { %425 = shalt.err (!%p422_p2)
}
   0xb   :  { %s426_s8 = scalar_lea.vmem %s34_s12, 128  ;;  %p431_p4 = scmp.lt.s32.totalorder %s34_s12, %s34_s12 }
   0xc   :  { %p427_p3 = scmp.ne.s32.totalorder %s34_s12, %s426_s8  ;;  %p432_p5 = scmp.lt.s32.totalorder %s426_s8, %s426_s8 }
   0xe   :  { %p433_p6 = por %p432_p5, %p431_p4 }
  0x10   :  { %p434_p7 = pnand %p433_p6, %p427_p3 }
  0x12   :  { %437 = shalt.err (!%p434_p7)
}
  0x13   :  { %s487_s20 = smov 64   ;;  %s488_s21 = smov 4  }
  0x14   :  { %39 = dma.hbm_to_vmem [thread:$0]  %s617_s1, 128, %s34_s12, [#allocation6], %s487_s20, %s487_s20, %s488_s21  }
  0x15   :  { %s489_s24 = smov [#allocation3]   ;;  %s490_s26 = smov [#allocation7]  }
  0x16   :  { %s24_s25 = sshll.u32 %s489_s24, 4  ;;  %s46_s27 = sshll.u32 %s490_s26, 4  ;;  %s25_s25 = int_to_ptr.vmem [resolvable:$true] %s24_s25  ;;  %s47_s27 = int_to_ptr.vmem [resolvable:$true] %s46_s27 }
  0x17   :  { %s438_s30 = scalar_lea.hbm %s616_s0, 128 }
  0x18   :  { %p439_p8 = scmp.ne.s32.totalorder %s616_s0, %s438_s30  ;;  %p442_p9 = scmp.lt.u32.totalorder %s438_s30, %s616_s0 }
  0x1a   :  { %p444_p10 = pnand %p442_p9, %p439_p8 }
  0x1c   :  { %447 = shalt.err (!%p444_p10)
}
  0x1d   :  { %s448_s1 = scalar_lea.vmem %s25_s25, 128  ;;  %p453_p12 = scmp.lt.s32.totalorder %s25_s25, %s25_s25 }
  0x1e   :  { %p449_p11 = scmp.ne.s32.totalorder %s25_s25, %s448_s1  ;;  %p454_p13 = scmp.lt.s32.totalorder %s448_s1, %s448_s1 }
  0x20   :  { %p455_p0 = por %p454_p13, %p453_p12 }
  0x22   :  { %p456_p1 = pnand %p455_p0, %p449_p11 }
  0x24   :  { %459 = shalt.err (!%p456_p1)
}
  0x25   :  { %27 = dma.hbm_to_vmem [thread:$0]  %s616_s0, 128, %s25_s25, [#allocation4]  }
  0x26   :  { %s460_s18 = scalar_lea.hbm %s618_s2, 16 }
  0x27   :  { %p461_p2 = scmp.ne.s32.totalorder %s618_s2, %s460_s18  ;;  %p464_p3 = scmp.lt.u32.totalorder %s460_s18, %s618_s2 }
  0x29   :  { %p466_p4 = pnand %p464_p3, %p461_p2 }
  0x2b   :  { %469 = shalt.err (!%p466_p4)
}
  0x2c   :  { %s470_s22 = scalar_lea.vmem %s47_s27, 16  ;;  %s474_s23 = scalar_lea.vmem %s47_s27, 32 }
  0x2d   :  { %p471_p5 = scmp.ne.s32.totalorder %s47_s27, %s470_s22  ;;  %p475_p6 = scmp.lt.s32.totalorder %s47_s27, %s47_s27 }
  0x2e   :  { %p476_p7 = scmp.lt.s32.totalorder %s474_s23, %s470_s22 }
  0x30   :  { %p477_p8 = por %p476_p7, %p475_p6 }
  0x32   :  { %p478_p9 = pnand %p477_p8, %p471_p5 }
  0x34   :  { %481 = shalt.err (!%p478_p9)
}
  0x35   :  { %49 = dma.hbm_to_vmem [thread:$0]  %s618_s2, 16, %s47_s27, [#allocation6]  }
  0x36   :  { %482 = dma.done.wait [#allocation4], 128  }
  0x37   :  { %483 = vsyncadd [#allocation4], 4294967168 }
  0x38   :  { %484 = dma.done.wait [#allocation6], 144  }
  0x39   :  { %485 = vsyncadd [#allocation6], 4294967152  ;;  %v491_v1 = vmov 0.0   ;;  %vm492_vm0 = vmmov 0   ;;  %v409_v2 = vld [vmem:[#allocation5] sm:$0xff]   ;;  %v72_v3 = vld [vmem:[#allocation3] sm:$0xff] }
  0x3a   :  { %372 = vmatprep.subr.bf16.mxu0 %v491_v1  ;;  %374 = vmatprep.mubr.msk.bf16.mxu0 %vm492_vm0, %v491_v1  ;;  %vm89_vm1 = vcmask 130048   ;;  %v73_v4 = vpack.c.bf16 %v72_v3, %v72_v3  ;;  %v410_v5 = vld [vmem:[%s619_s3] sm:$0xff]   ;;  %v411_v6 = vld [vmem:[%s619_s3 + $0x8] sm:$0xff]   ;;  %v346_v8 = vld [vmem:[#allocation7] ss:$0 sm:$0xff]  ;;  %vm158_vm2 = vcmask 261120  }
  0x3b   :  { %378 = vmatprep.subr.bf16.mxu1 %v491_v1  ;;  %382 = vmatprep.mubr.msk.bf16.mxu1 %vm492_vm0, %v491_v1  ;;  %v412_v7 = vld [vmem:[%s621_s5] sm:$0xff]   ;;  %v413_v16 = vld [vmem:[%s621_s5 + $0x8] sm:$0xff]   ;;  %vm338_vm3 = vcmask 7168  }
  0x3c   :  { %373 = vmatpush3.bf16.msra.mxu0 %v409_v2  ;;  %379 = vmatpush3.bf16.msra.mxu1 %v410_v5  ;;  %v414_v17 = vld [vmem:[%s623_s7] sm:$0xff]   ;;  %v415_v26 = vld [vmem:[%s623_s7 + $0x8] sm:$0xff]  }
  0x3d   :  { %386 = vmatprep.subr.bf16.mxu0 %v491_v1  ;;  %380 = vmatprep.subr.bf16.mxu1 %v491_v1  ;;  %v349_v18 = vld [vmem:[%s620_s4] ss:$0 sm:$0xff] }
  0x3e   :  { %v353_v27 = vld [vmem:[%s622_s6] ss:$0 sm:$0xff] }
  0x3f   :  { %375 = vmatmul.mubr.msk.bf16.vlgmr.msra.gmra.mrb[0].mxu0 %vm89_vm1, %v73_v4  ;;  %v357_v35 = vld [vmem:[#allocation2] ss:$0 sm:$0xff] }
  0x40   :  { %390 = vmatprep.mubr.msk.bf16.mxu0 %vm492_vm0, %v491_v1  ;;  %381 = vmatpush3.bf16.msra.mxu1 %v411_v6 }
  0x41   :  { %394 = vmatprep.subr.bf16.mxu1 %v491_v1  ;;  %387 = vmatpush3.bf16.msra.mxu0 %v412_v7 }
  0x42   :  { %388 = vmatprep.subr.bf16.mxu0 %v491_v1 }
  0x45   :  { %389 = vmatpush3.bf16.msra.mxu0 %v413_v16 }
 0x112   :  { %v127_v9 = vpop.f32.mrb[0].mxu0 }
 0x113   :  { %v128_v10 = vadd.f32 %v346_v8, %v127_v9  ;;  %v376_v11 = vpop.f32.mrb[1].mxu0 }
 0x114   :  { %v130_v12 = vpop.f32.mrb[2].mxu0 }
 0x115   :  { %v133_v13 = vmax.f32 %v128_v10, 0.0  ;;  %v377_v14 = vpop.f32.mrb[3].mxu0 }
 0x117   :  { %v134_v15 = vpack.c.bf16 %v133_v13, %v133_v13 }
 0x119   :  { %383 = vmatmul.mubr.msk.bf16.vlgmr.msra.gmra.mrb[0].mxu1 %vm158_vm2, %v134_v15 }
 0x11a   :  { %398 = vmatprep.mubr.msk.bf16.mxu1 %vm492_vm0, %v491_v1  ;;  %395 = vmatpush3.bf16.msra.mxu1 %v414_v17 }
 0x11b   :  { %396 = vmatprep.subr.bf16.mxu1 %v491_v1 }
 0x11e   :  { %397 = vmatpush3.bf16.msra.mxu1 %v415_v26 }
 0x1ec   :  { %v196_v19 = vpop.f32.mrb[0].mxu1 }
 0x1ed   :  { %v197_v20 = vadd.f32 %v349_v18, %v196_v19  ;;  %v384_v21 = vpop.f32.mrb[1].mxu1 }
 0x1ee   :  { %v199_v22 = vpop.f32.mrb[2].mxu1 }
 0x1ef   :  { %v202_v23 = vmax.f32 %v197_v20, 0.0  ;;  %v385_v24 = vpop.f32.mrb[3].mxu1 }
 0x1f1   :  { %v203_v25 = vpack.c.bf16 %v202_v23, %v202_v23 }
 0x1f3   :  { %391 = vmatmul.mubr.msk.bf16.vlgmr.msra.gmra.mrb[4].mxu0 %vm158_vm2, %v203_v25 }
 0x2c6   :  { %v264_v28 = vpop.f32.mrb[4].mxu0 }
 0x2c7   :  { %v265_v29 = vadd.f32 %v353_v27, %v264_v28  ;;  %v392_v30 = vpop.f32.mrb[5].mxu0 }
 0x2c8   :  { %v267_v31 = vpop.f32.mrb[6].mxu0 }
 0x2c9   :  { %v270_v32 = vmax.f32 %v265_v29, 0.0  ;;  %v393_v33 = vpop.f32.mrb[7].mxu0 }
 0x2cb   :  { %v271_v34 = vpack.c.bf16 %v270_v32, %v270_v32 }
 0x2cd   :  { %399 = vmatmul.mubr.msk.bf16.vlgmr.msra.gmra.mrb[4].mxu1 %vm158_vm2, %v271_v34 }
 0x3a0   :  { %v332_v36 = vpop.f32.mrb[4].mxu1 }
 0x3a1   :  { %v333_v37 = vadd.f32 %v357_v35, %v332_v36  ;;  %v400_v38 = vpop.f32.mrb[5].mxu1 }
 0x3a2   :  { %v335_v39 = vpop.f32.mrb[6].mxu1 }
 0x3a3   :  { %339 = vst.msk [vmem:[%s625_s9] sm:$0xff] %vm338_vm3, %v333_v37  ;;  %v401_v40 = vpop.f32.mrb[7].mxu1 }
 0x3a4   :  { %344 = vsyncpa [#allocation4], 1 }
 0x3a5   :  { %345 = vsyncpa [#allocation6], 1 }

</bundles_post_ra>
